<compile_context>
chip_gen: v7x
topology: tpu7x:2x2x1
jax: 0.10.0
libtpu: 0.0.40
codegen_flags: <defaults>
</compile_context>

<pallas_src>
import math
import functools

import jax
import jax.numpy as jnp
from jax.experimental import pallas as pl
from jax.experimental.pallas import tpu as pltpu

INF_VAL = 10000.0


def create_pe(max_len: int, d_model: int, dtype=jnp.float32) -> jnp.ndarray:
    """Exact port of PositionalEncoding.create_pe (buffer setup, plain JAX glue)."""
    positions = jnp.arange(0, max_len, dtype=jnp.float32)[:, None]            # (L, 1)
    div_term = jnp.exp(
        jnp.arange(0, d_model, 2, dtype=jnp.float32) * -(math.log(INF_VAL) / d_model)
    )                                                                          # (D/2,)
    angles = positions * div_term                                              # (L, D/2)
    pe = jnp.zeros((max_len, d_model), dtype=jnp.float32)
    pe = pe.at[:, 0::2].set(jnp.sin(angles))
    pe = pe.at[:, 1::2].set(jnp.cos(angles))
    return pe[None].astype(dtype)                                              # (1, L, D)


def _posenc_kernel(x_ref, pe_ref, o_ref, *, xscale):
    # x_ref: (B, S, tile_c) sublane/lane-dense tile; pe_ref: (S, tile_c).
    x = x_ref[...]
    if xscale is not None:
        x = x * jnp.asarray(xscale, dtype=x.dtype)
    pe = pe_ref[...].astype(x.dtype)           # in-kernel cast: ~free on the VPU
    o_ref[...] = x + pe[None, ...]             # broadcast over the batch (leading) dim


def _native_sublanes(itemsize: int) -> int:
    # f32 -> 8, bf16/f16 -> 16, int8/fp8 -> 32 sublanes per packed vreg.
    return max(8, 8 * (4 // max(1, itemsize)))


def _round_up(v: int, m: int) -> int:
    return ((v + m - 1) // m) * m


def _ws_budget_bytes() -> int:
    """Per-generation budget for the pipelined working set (2x in + 2x out + 2x pe)."""
    try:
        kind = jax.devices()[0].device_kind.lower()
    except Exception:
        kind = ""
    if "v6" in kind:
        return 24 << 20      # 128 MiB physical / 32 MiB scoped default: go big
    if "v7" in kind:
        return 20 << 20      # only 64 MiB physical VMEM: keep headroom
    return 12 << 20          # v5e (16 MiB scoped default) and everything else


def positional_encoding_forward(x, pe_buffer, xscale=None, cache_len=0, donate_x=False):
    """Forward pass: returns (x_with_pos, pos_emb).

    x:         (B, T, D)
    pe_buffer: (1, max_len, D)  — precomputed sinusoidal table (any dtype)
    donate_x:  alias the output onto x's buffer (only helps if the caller
               actually donates x at the jit boundary).
    """
    B, T, D = x.shape
    input_len = T + cache_len
    assert pe_buffer.shape[1] >= input_len, "extend_pe: max_len too small"
    # x (B,T,D) + pos_emb (1,T+cache_len,D) only broadcasts for cache_len == 0,
    # same as the reference module.
    assert cache_len == 0, "cache_len > 0 does not broadcast in the reference module"
    # TODO(synk): streaming-decode (cache_len > 0) positional shift not implemented.

    # Second output is a pure slice of the buffer: no kernel work, original dtype.
    pos_emb = pe_buffer[:, :input_len, :]                                      # (1, T, D)

    L = T * D
    x_item = jnp.dtype(x.dtype).itemsize
    pe_item = jnp.dtype(pe_buffer.dtype).itemsize

    # Sublane/lane-dense view: (B, T, D) -> (B, S, L/S), pe -> (S, L/S).
    s = _native_sublanes(x_item)
    while s > 1 and L % s != 0:
        s //= 2
    C = L // s

    x3 = x.reshape(B, s, C)
    pe3 = pos_emb.reshape(s, C)          # NOT cast here; cast happens in-kernel

    # Padded-sublane VMEM accounting (second-to-last block dim rounds up per dtype).
    pad_s_x = _round_up(s, _native_sublanes(x_item))
    pad_s_pe = _round_up(s, _native_sublanes(pe_item))

    if C <= 128:
        tile_c = C                       # full extent (allowed even if < 128)
    else:
        # Bytes of pipelined working set per unit of tile_c: 2x(x + out) + 2x pe.
        per_c = 2 * (2 * B * pad_s_x * x_item + pad_s_pe * pe_item)
        tile_c = max(128, (_ws_budget_bytes() // max(1, per_c)) // 128 * 128)
        if tile_c >= C:
            if C >= 256:
                # Keep >= 2 grid steps: DMA/compute overlap everywhere, and lets
                # the "parallel" axis shard across both v7x TensorCores.
                tile_c = _round_up(pl.cdiv(C, 2), 128)
                if tile_c >= C:
                    tile_c = C
            else:
                tile_c = C

    grid = (pl.cdiv(C, tile_c),)

    # Explicit scoped-VMEM limit sized to the actual (padded) working set.
    x_block_b = B * pad_s_x * tile_c * x_item
    pe_block_b = pad_s_pe * tile_c * pe_item
    ws_bytes = 2 * (2 * x_block_b + pe_block_b)
    vmem_limit = int(min(max(ws_bytes + (2 << 20), 8 << 20), 32 << 20))

    # Advisory cost for XLA's scheduler: HBM-bound elementwise op.
    cost = pl.CostEstimate(
        flops=2 * B * L,                                   # one mul + one add per elem
        transcendentals=0,
        bytes_accessed=2 * B * L * x_item + L * pe_item,   # read x, write out, read pe
    )

    kernel = functools.partial(_posenc_kernel, xscale=xscale)

    out3 = pl.pallas_call(
        kernel,
        out_shape=jax.ShapeDtypeStruct((B, s, C), x.dtype),
        grid_spec=pltpu.PrefetchScalarGridSpec(
            num_scalar_prefetch=0,
            grid=grid,
            in_specs=[
                pl.BlockSpec((B, s, tile_c), lambda c: (0, 0, c)),   # x tile
                pl.BlockSpec((s, tile_c), lambda c: (0, c)),         # shared pe tile
            ],
            out_specs=pl.BlockSpec((B, s, tile_c), lambda c: (0, 0, c)),
        ),
        compiler_params=pltpu.CompilerParams(
            dimension_semantics=("parallel",),
            vmem_limit_bytes=vmem_limit,
        ),
        cost_estimate=cost,
        input_output_aliases=({0: 0} if donate_x else {}),
    )(x3, pe3)

    return out3.reshape(B, T, D), pos_emb


if __name__ == "__main__":
    # Small shapes consistent with (batch, time, feature) input.
    B, T, D = 2, 8, 32
    max_len = 64
    d_model = D
    xscale = math.sqrt(d_model)  # module is typically built with xscale=sqrt(d_model)

    key = jax.random.PRNGKey(0)
    x = jax.random.normal(key, (B, T, D), dtype=jnp.float32)

    pe_buffer = create_pe(max_len, d_model, dtype=jnp.float32)   # (1, max_len, D)

    out, pos_emb = positional_encoding_forward(x, pe_buffer, xscale=xscale, cache_len=0)
    out = jax.block_until_ready(out)
    pos_emb = jax.block_until_ready(pos_emb)

    # Pure-JAX reference check (eval-mode semantics).
    ref_pos = pe_buffer[:, :T, :]
    ref_out = x * xscale + ref_pos
    assert out.shape == (B, T, D) and pos_emb.shape == (1, T, D)
    assert pos_emb.dtype == pe_buffer.dtype
    assert jnp.allclose(out, ref_out, atol=1e-5, rtol=1e-5)
    assert jnp.allclose(pos_emb, ref_pos, atol=1e-6, rtol=1e-6)

    print("KERNEL_OK")
</pallas_src>

<mosaic_0001>
module attributes {stable_mosaic.version = 11 : i64} {
  func.func @_posenc_kernel(%arg0: i32, %arg1: memref<2x8x32xf32, #tpu.memory_space<vmem>>, %arg2: memref<8x32xf32, #tpu.memory_space<vmem>>, %arg3: memref<2x8x32xf32, #tpu.memory_space<vmem>>) attributes {dimension_semantics = [#tpu.dimension_semantics<parallel>], iteration_bounds = array<i64: 1>, scalar_prefetch = 0 : i64, scratch_operands = 0 : i64, tpu.core_type = #tpu.core_type<tc>, window_params = [{transform_indices = @transform_0, window_bounds = array<i64: 2, 8, 32>}, {transform_indices = @transform_1, window_bounds = array<i64: 8, 32>}, {transform_indices = @transform_2, window_bounds = array<i64: 2, 8, 32>}]} {
    %c0 = arith.constant 0 : index
    %c0_0 = arith.constant 0 : index
    %c0_1 = arith.constant 0 : index
    %0 = vector.load %arg1[%c0, %c0_0, %c0_1] : memref<2x8x32xf32, #tpu.memory_space<vmem>>, vector<2x8x32xf32>
    %cst = arith.constant 5.65685415 : f32
    %1 = vector.broadcast %cst : f32 to vector<2x8x32xf32>
    %2 = arith.mulf %0, %1 : vector<2x8x32xf32>
    %c0_2 = arith.constant 0 : index
    %c0_3 = arith.constant 0 : index
    %3 = vector.load %arg2[%c0_2, %c0_3] : memref<8x32xf32, #tpu.memory_space<vmem>>, vector<8x32xf32>
    %4 = vector.shape_cast %3 : vector<8x32xf32> to vector<1x8x32xf32>
    %5 = vector.broadcast %4 : vector<1x8x32xf32> to vector<2x8x32xf32>
    %6 = arith.addf %2, %5 : vector<2x8x32xf32>
    %c0_4 = arith.constant 0 : index
    %c0_5 = arith.constant 0 : index
    %c0_6 = arith.constant 0 : index
    %7 = vector.load %arg3[%c0_4, %c0_5, %c0_6] : memref<2x8x32xf32, #tpu.memory_space<vmem>>, vector<2x8x32xf32>
    tpu.vector_store %arg3[%c0_4, %c0_5, %c0_6], %6 {strides = array<i32>} : memref<2x8x32xf32, #tpu.memory_space<vmem>>, vector<2x8x32xf32>,
    return
  }
  func.func @transform_0(%arg0: i32) -> (i32, i32, i32) {
    %c0_i32 = arith.constant 0 : i32
    %c0_i32_0 = arith.constant 0 : i32
    %c0_i32_1 = arith.constant 0 : i32
    return %c0_i32, %c0_i32_0, %arg0 : i32, i32, i32
  }
  func.func @transform_1(%arg0: i32) -> (i32, i32) {
    %c0_i32 = arith.constant 0 : i32
    %c0_i32_0 = arith.constant 0 : i32
    return %c0_i32, %arg0 : i32, i32
  }
  func.func @transform_2(%arg0: i32) -> (i32, i32, i32) {
    %c0_i32 = arith.constant 0 : i32
    %c0_i32_0 = arith.constant 0 : i32
    %c0_i32_1 = arith.constant 0 : i32
    return %c0_i32, %c0_i32_0, %arg0 : i32, i32, i32
  }
}

</mosaic_0001>

<bundles_post_ra>
// kernel: tpu_custom_call.1
= control target key start
LH: loop header
LB: loop body
LE: loop exit
PB: predicated region body
PF: predicated region fallthrough
CT: control target
= control target key end

     0   :  { %7 = vsyncpa [#allocation3], 0  ;;  %s205_s0 = inlined_call_operand.hbm [shape: f32[2,8,32], index: 0, kind: input, shape index: {}]   ;;  %s206_s1 = inlined_call_operand.hbm [shape: f32[8,32], index: 1, kind: input, shape index: {}]   ;;  %s207_s2 = inlined_call_operand.hbm [shape: f32[2,8,32], index: 2, kind: output, shape index: {}]  }
   0x1   :  { %8 = vsyncpa [#allocation6], 0 }
   0x2   :  { %9 = vsyncpa [#allocation4], 0  ;;  %s143_s9 = smov [#allocation2]   ;;  %s71_s13 = scalar_lea.hbm %s205_s0, 256 }
   0x3   :  { %s15_s10 = sshll.u32 %s143_s9, 4  ;;  %p72_p0 = scmp.ne.s32.totalorder %s205_s0, %s71_s13  ;;  %s16_s10 = int_to_ptr.vmem [resolvable:$true] %s15_s10 }
   0x4   :  { %p75_p1 = scmp.lt.u32.totalorder %s71_s13, %s205_s0 }
   0x6   :  { %p77_p2 = pnand %p75_p1, %p72_p0 }
   0x8   :  { %80 = shalt.err (!%p77_p2)
}
   0x9   :  { %s81_s18 = scalar_lea.vmem %s16_s10, 256  ;;  %p86_p4 = scmp.lt.s32.totalorder %s16_s10, %s16_s10 }
   0xa   :  { %p82_p3 = scmp.ne.s32.totalorder %s16_s10, %s81_s18  ;;  %p87_p5 = scmp.lt.s32.totalorder %s81_s18, %s81_s18 }
   0xc   :  { %p88_p6 = por %p87_p5, %p86_p4 }
   0xe   :  { %p89_p7 = pnand %p88_p6, %p82_p3 }
  0x10   :  { %92 = shalt.err (!%p89_p7)
}
  0x11   :  { %s144_s19 = smov 128   ;;  %s145_s20 = smov 8  }
  0x12   :  { %21 = dma.hbm_to_vmem [thread:$0]  %s205_s0, 256, %s16_s10, [#allocation3], %s144_s19, %s144_s19, %s145_s20  }
  0x13   :  { %s146_s23 = smov [#allocation5]   ;;  %s93_s27 = scalar_lea.hbm %s206_s1, 128 }
  0x14   :  { %s28_s24 = sshll.u32 %s146_s23, 4  ;;  %p94_p8 = scmp.ne.s32.totalorder %s206_s1, %s93_s27  ;;  %s29_s24 = int_to_ptr.vmem [resolvable:$true] %s28_s24 }
  0x15   :  { %p97_p9 = scmp.lt.u32.totalorder %s93_s27, %s206_s1 }
  0x17   :  { %p99_p10 = pnand %p97_p9, %p94_p8 }
  0x19   :  { %102 = shalt.err (!%p99_p10)
}
  0x1a   :  { %s103_s4 = scalar_lea.vmem %s29_s24, 128  ;;  %p108_p12 = scmp.lt.s32.totalorder %s29_s24, %s29_s24 }
  0x1b   :  { %p104_p11 = scmp.ne.s32.totalorder %s29_s24, %s103_s4  ;;  %p109_p13 = scmp.lt.s32.totalorder %s103_s4, %s103_s4 }
  0x1d   :  { %p110_p0 = por %p109_p13, %p108_p12 }
  0x1f   :  { %p111_p1 = pnand %p110_p0, %p104_p11 }
  0x21   :  { %114 = shalt.err (!%p111_p1)
}
  0x22   :  { %31 = dma.hbm_to_vmem [thread:$0]  %s206_s1, 128, %s29_s24, [#allocation6]  }
  0x23   :  { %137 = dma.done.wait [#allocation3], 256  }
  0x24   :  { %138 = vsyncadd [#allocation3], 4294967040 }
  0x25   :  { %139 = dma.done.wait [#allocation6], 128  }
  0x26   :  { %140 = vsyncadd [#allocation6], 4294967168  ;;  %v38_v0 = vld [vmem:[#allocation2] sm:$0xff]  ;;  %v42_v1 = vld [vmem:[#allocation5] sm:$0xff]  ;;  %s147_s6 = smov [#allocation7]   ;;  %vm45_vm0 = vcmask 261120  }
  0x27   :  { %v39_v2 = vld [vmem:[#allocation2 + $0x8] sm:$0xff]  ;;  %s53_s7 = sshll.u32 %s147_s6, 4  ;;  %v40_v3 = vmul.f32 5.656854, %v38_v0  ;;  %s54_s7 = int_to_ptr.vmem [resolvable:$true] %s53_s7 }
  0x28   :  { %v41_v4 = vmul.f32 5.656854, %v39_v2  ;;  %s115_s8 = scalar_lea.vmem %s54_s7, 256  ;;  %p120_p3 = scmp.lt.s32.totalorder %s54_s7, %s54_s7 }
  0x29   :  { %v43_v5 = vadd.f32 %v42_v1, %v40_v3  ;;  %p116_p2 = scmp.ne.s32.totalorder %s54_s7, %s115_s8  ;;  %p121_p4 = scmp.lt.s32.totalorder %s115_s8, %s115_s8 }
  0x2a   :  { %v44_v6 = vadd.f32 %v42_v1, %v41_v4 }
  0x2b   :  { %46 = vst.msk [vmem:[#allocation7] sm:$0xff] %vm45_vm0, %v43_v5  ;;  %p122_p5 = por %p121_p4, %p120_p3 }
  0x2c   :  { %47 = vst.msk [vmem:[#allocation7 + $0x8] sm:$0xff] %vm45_vm0, %v44_v6 }
  0x2d   :  { %p123_p6 = pnand %p122_p5, %p116_p2 }
  0x2f   :  { %126 = shalt.err (!%p123_p6)
}
  0x30   :  { %s127_s10 = scalar_lea.hbm %s207_s2, 256 }
  0x31   :  { %p128_p7 = scmp.ne.s32.totalorder %s207_s2, %s127_s10  ;;  %p131_p8 = scmp.lt.u32.totalorder %s127_s10, %s207_s2 }
  0x33   :  { %p133_p9 = pnand %p131_p8, %p128_p7 }
  0x35   :  { %136 = shalt.err (!%p133_p9)
}
  0x36   :  { %59 = dma.vmem_to_hbm [thread:$0]  %s54_s7, 256, %s207_s2, [#allocation4], %s144_s19, %s144_s19, %s145_s20  }
  0x37   :  { %141 = dma.done.wait [#allocation4], 256  }
  0x38   :  { %142 = vsyncadd [#allocation4], 4294967040 }
  0x39   :  { %63 = vsyncpa [#allocation3], 1 }
  0x3a   :  { %64 = vsyncpa [#allocation6], 1 }
  0x3b   :  { %65 = vsyncpa [#allocation4], 1 }

</bundles_post_ra>
